<compile_context>
chip_gen: v7x
topology: tpu7x:2x2x1
jax: 0.10.0
libtpu: 0.0.40
codegen_flags: <defaults>
</compile_context>

<pallas_src>
import jax
import jax.numpy as jnp
from jax.experimental import pallas as pl
from jax.experimental.pallas import tpu as pltpu


def _net_kernel(user_idx_ref, pos_idx_ref, neg_idx_ref,    # SMEM (scalar prefetch)
                embd1_ref, embd2_ref,                       # VMEM embedding tables
                w1u_ref, w1i_ref, b1_ref,                   # fc1 split
                w2_ref, b2_ref,
                w3_ref, b3_ref,
                w4_ref, b4_ref,                             # w4 as [1, 10] row
                o_ref,                                      # [2, B_pad, 128]
                uvec_ref, pvec_ref, nvec_ref):              # VMEM gather scratch
    b_pad = uvec_ref.shape[0]

    # In-kernel embedding gather: dynamic single-row slices from the
    # VMEM-resident tables into sublane-aligned scratch (indices from SMEM).
    for i in range(b_pad):
        u = user_idx_ref[i]
        p = pos_idx_ref[i]
        n = neg_idx_ref[i]
        uvec_ref[pl.ds(i, 1), :] = embd1_ref[pl.ds(u, 1), :]
        pvec_ref[pl.ds(i, 1), :] = embd2_ref[pl.ds(p, 1), :]
        nvec_ref[pl.ds(i, 1), :] = embd2_ref[pl.ds(n, 1), :]

    uvec = uvec_ref[...]                                    # [B_pad, 30]
    pvec = pvec_ref[...]                                    # [B_pad, 50]
    nvec = nvec_ref[...]                                    # [B_pad, 50]

    b1 = b1_ref[...]
    # Shared user part of fc1, computed once for both heads.
    u_part = jnp.dot(uvec, w1u_ref[...], preferred_element_type=jnp.float32)
    h_pos = jnp.maximum(
        u_part + jnp.dot(pvec, w1i_ref[...], preferred_element_type=jnp.float32) + b1,
        0.0)
    h_neg = jnp.maximum(
        u_part + jnp.dot(nvec, w1i_ref[...], preferred_element_type=jnp.float32) + b1,
        0.0)

    w2 = w2_ref[...]
    b2 = b2_ref[...]
    w3 = w3_ref[...]
    b3 = b3_ref[...]
    w4 = w4_ref[...]                                        # [1, 10]
    b4 = b4_ref[...]                                        # [1, 1]

    def tail(h):
        h = jnp.maximum(jnp.dot(h, w2, preferred_element_type=jnp.float32) + b2, 0.0)
        h = jnp.maximum(jnp.dot(h, w3, preferred_element_type=jnp.float32) + b3, 0.0)
        # fc4 (10 -> 1): VPU multiply + XLU lane reduce, no 1-wide MXU op.
        return jnp.sum(h * w4, axis=-1, keepdims=True) + b4  # [B_pad, 1]

    lanes = o_ref.shape[-1]
    o_ref[0] = jnp.broadcast_to(tail(h_pos), (b_pad, lanes))  # lane-dense store
    o_ref[1] = jnp.broadcast_to(tail(h_neg), (b_pad, lanes))


def _run_net(params, user_idx, pos_idx, neg_idx, b_pad):
    embd1 = params["embd1"]
    embd2 = params["embd2"]

    def spec2d(shape):
        # `shape` is passed by value -> no late-binding on the closure.
        return pl.BlockSpec(shape, lambda i, u, p, n: (0, 0))

    tensor_args = (embd1, embd2,
                   params["w1_user"], params["w1_item"], params["b1"],
                   params["w2"], params["b2"],
                   params["w3"], params["b3"],
                   params["w4_row"], params["b4"])
    in_specs = [spec2d(a.shape) for a in tensor_args]

    grid_spec = pltpu.PrefetchScalarGridSpec(
        num_scalar_prefetch=3,
        grid=(1,),
        in_specs=in_specs,
        out_specs=pl.BlockSpec((2, b_pad, 128), lambda i, u, p, n: (0, 0, 0)),
        scratch_shapes=[
            pltpu.VMEM((b_pad, embd1.shape[1]), jnp.float32),
            pltpu.VMEM((b_pad, embd2.shape[1]), jnp.float32),
            pltpu.VMEM((b_pad, embd2.shape[1]), jnp.float32),
        ],
    )

    return pl.pallas_call(
        _net_kernel,
        out_shape=jax.ShapeDtypeStruct((2, b_pad, 128), jnp.float32),
        grid_spec=grid_spec,
        compiler_params=pltpu.CompilerParams(
            dimension_semantics=("arbitrary",)),
    )(user_idx, pos_idx, neg_idx, *tensor_args)


def net_forward(params, user, pos, neg):
    """Reproduces Net.forward: returns (pos_y, neg_y), each [B, 1] f32."""
    batch = user.shape[0]
    b_pad = max(8, -(-batch // 8) * 8)  # pad batch to a multiple of 8 sublanes

    def pad_idx(idx):
        idx = idx.astype(jnp.int32)
        return jnp.zeros((b_pad,), jnp.int32).at[:batch].set(idx)

    out = _run_net(params, pad_idx(user), pad_idx(pos), pad_idx(neg), b_pad)
    pos_y = out[0, :batch, 0:1]
    neg_y = out[1, :batch, 0:1]
    return pos_y, neg_y


def init_params(key, num_user, num_item):
    """Deterministic parameter init mirroring the module's __init__ shapes."""
    ks = jax.random.split(key, 10)

    def linear(kw, kb, fan_in, fan_out):
        bound = 1.0 / float(fan_in) ** 0.5
        w = jax.random.uniform(kw, (fan_in, fan_out), jnp.float32, -bound, bound)
        b = jax.random.uniform(kb, (1, fan_out), jnp.float32, -bound, bound)
        return w, b

    params = {}
    params["embd1"] = jax.random.normal(ks[0], (num_user, 30), jnp.float32)
    params["embd2"] = jax.random.normal(ks[1], (num_item, 50), jnp.float32)
    w1, params["b1"] = linear(ks[2], ks[3], 80, 60)
    params["w1_user"] = w1[:30]          # fc1 user half  [30, 60]
    params["w1_item"] = w1[30:]          # fc1 item half  [50, 60]
    params["w2"], params["b2"] = linear(ks[4], ks[5], 60, 30)
    params["w3"], params["b3"] = linear(ks[6], ks[7], 30, 10)
    w4, params["b4"] = linear(ks[8], ks[9], 10, 1)
    params["w4_row"] = w4.T              # [1, 10], used as a VPU row
    return params


def net_forward_ref(params, user, pos, neg):
    """Pure-JAX reference identical to the original PyTorch forward."""
    user_vec = params["embd1"][user]
    pos_vec = params["embd2"][pos]
    neg_vec = params["embd2"][neg]
    w1 = jnp.concatenate([params["w1_user"], params["w1_item"]], axis=0)

    def mlp(x):
        h = jnp.maximum(x @ w1 + params["b1"], 0.0)
        h = jnp.maximum(h @ params["w2"] + params["b2"], 0.0)
        h = jnp.maximum(h @ params["w3"] + params["b3"], 0.0)
        return h @ params["w4_row"].T + params["b4"]

    pos_x = jnp.concatenate([user_vec, pos_vec], axis=1)
    neg_x = jnp.concatenate([user_vec, neg_vec], axis=1)
    return mlp(pos_x), mlp(neg_x)


if __name__ == "__main__":
    num_user = 20
    num_item = 40
    batch = 8

    key = jax.random.PRNGKey(0)
    kp, ku, kpos, kneg = jax.random.split(key, 4)

    params = init_params(kp, num_user, num_item)
    user = jax.random.randint(ku, (batch,), 0, num_user, dtype=jnp.int32)
    pos = jax.random.randint(kpos, (batch,), 0, num_item, dtype=jnp.int32)
    neg = jax.random.randint(kneg, (batch,), 0, num_item, dtype=jnp.int32)

    pos_y, neg_y = jax.jit(net_forward)(params, user, pos, neg)
    jax.block_until_ready((pos_y, neg_y))

    assert pos_y.shape == (batch, 1) and neg_y.shape == (batch, 1)

    # Numerical check against the pure-JAX reference (generous tolerance to
    # accommodate MXU default-precision f32 matmul passes).
    ref_pos, ref_neg = jax.jit(net_forward_ref)(params, user, pos, neg)
    assert jnp.allclose(pos_y, ref_pos, rtol=1e-2, atol=1e-2)
    assert jnp.allclose(neg_y, ref_neg, rtol=1e-2, atol=1e-2)

    print("KERNEL_OK")
</pallas_src>

<mosaic_0001>
module attributes {stable_mosaic.version = 11 : i64} {
  func.func @_net_kernel(%arg0: i32, %arg1: memref<8xi32, #tpu.memory_space<smem>>, %arg2: memref<8xi32, #tpu.memory_space<smem>>, %arg3: memref<8xi32, #tpu.memory_space<smem>>, %arg4: memref<20x30xf32, #tpu.memory_space<vmem>>, %arg5: memref<40x50xf32, #tpu.memory_space<vmem>>, %arg6: memref<30x60xf32, #tpu.memory_space<vmem>>, %arg7: memref<50x60xf32, #tpu.memory_space<vmem>>, %arg8: memref<1x60xf32, #tpu.memory_space<vmem>>, %arg9: memref<60x30xf32, #tpu.memory_space<vmem>>, %arg10: memref<1x30xf32, #tpu.memory_space<vmem>>, %arg11: memref<30x10xf32, #tpu.memory_space<vmem>>, %arg12: memref<1x10xf32, #tpu.memory_space<vmem>>, %arg13: memref<1x10xf32, #tpu.memory_space<vmem>>, %arg14: memref<1x1xf32, #tpu.memory_space<vmem>>, %arg15: memref<2x8x128xf32, #tpu.memory_space<vmem>>, %arg16: memref<8x30xf32, #tpu.memory_space<vmem>>, %arg17: memref<8x50xf32, #tpu.memory_space<vmem>>, %arg18: memref<8x50xf32, #tpu.memory_space<vmem>>) attributes {dimension_semantics = [#tpu.dimension_semantics<arbitrary>], iteration_bounds = array<i64: 1>, scalar_prefetch = 3 : i64, scratch_operands = 3 : i64, tpu.core_type = #tpu.core_type<tc>, window_params = [{pipeline_mode = #tpu.pipeline_mode<synchronous>, transform_indices = @transform_0, window_bounds = array<i64: 20, 30>}, {pipeline_mode = #tpu.pipeline_mode<synchronous>, transform_indices = @transform_1, window_bounds = array<i64: 40, 50>}, {pipeline_mode = #tpu.pipeline_mode<synchronous>, transform_indices = @transform_2, window_bounds = array<i64: 30, 60>}, {pipeline_mode = #tpu.pipeline_mode<synchronous>, transform_indices = @transform_3, window_bounds = array<i64: 50, 60>}, {pipeline_mode = #tpu.pipeline_mode<synchronous>, transform_indices = @transform_4, window_bounds = array<i64: 1, 60>}, {pipeline_mode = #tpu.pipeline_mode<synchronous>, transform_indices = @transform_5, window_bounds = array<i64: 60, 30>}, {pipeline_mode = #tpu.pipeline_mode<synchronous>, transform_indices = @transform_6, window_bounds = array<i64: 1, 30>}, {pipeline_mode = #tpu.pipeline_mode<synchronous>, transform_indices = @transform_7, window_bounds = array<i64: 30, 10>}, {pipeline_mode = #tpu.pipeline_mode<synchronous>, transform_indices = @transform_8, window_bounds = array<i64: 1, 10>}, {pipeline_mode = #tpu.pipeline_mode<synchronous>, transform_indices = @transform_9, window_bounds = array<i64: 1, 10>}, {pipeline_mode = #tpu.pipeline_mode<synchronous>, transform_indices = @transform_10, window_bounds = array<i64: 1, 1>}, {pipeline_mode = #tpu.pipeline_mode<synchronous>, transform_indices = @transform_11, window_bounds = array<i64: 2, 8, 128>}]} {
    %c0 = arith.constant 0 : index
    %0 = memref.load %arg1[%c0] : memref<8xi32, #tpu.memory_space<smem>>
    %c0_0 = arith.constant 0 : index
    %1 = memref.load %arg2[%c0_0] : memref<8xi32, #tpu.memory_space<smem>>
    %c0_1 = arith.constant 0 : index
    %2 = memref.load %arg3[%c0_1] : memref<8xi32, #tpu.memory_space<smem>>
    %3 = arith.index_cast %0 : i32 to index
    %c0_2 = arith.constant 0 : index
    %4 = vector.load %arg4[%3, %c0_2] : memref<20x30xf32, #tpu.memory_space<vmem>>, vector<1x30xf32>
    %c0_3 = arith.constant 0 : index
    %c0_4 = arith.constant 0 : index
    %5 = vector.load %arg16[%c0_3, %c0_4] : memref<8x30xf32, #tpu.memory_space<vmem>>, vector<1x30xf32>
    tpu.vector_store %arg16[%c0_3, %c0_4], %4 {strides = array<i32>} : memref<8x30xf32, #tpu.memory_space<vmem>>, vector<1x30xf32>,
    %6 = arith.index_cast %1 : i32 to index
    %c0_5 = arith.constant 0 : index
    %7 = vector.load %arg5[%6, %c0_5] : memref<40x50xf32, #tpu.memory_space<vmem>>, vector<1x50xf32>
    %c0_6 = arith.constant 0 : index
    %c0_7 = arith.constant 0 : index
    %8 = vector.load %arg17[%c0_6, %c0_7] : memref<8x50xf32, #tpu.memory_space<vmem>>, vector<1x50xf32>
    tpu.vector_store %arg17[%c0_6, %c0_7], %7 {strides = array<i32>} : memref<8x50xf32, #tpu.memory_space<vmem>>, vector<1x50xf32>,
    %9 = arith.index_cast %2 : i32 to index
    %c0_8 = arith.constant 0 : index
    %10 = vector.load %arg5[%9, %c0_8] : memref<40x50xf32, #tpu.memory_space<vmem>>, vector<1x50xf32>
    %c0_9 = arith.constant 0 : index
    %c0_10 = arith.constant 0 : index
    %11 = vector.load %arg18[%c0_9, %c0_10] : memref<8x50xf32, #tpu.memory_space<vmem>>, vector<1x50xf32>
    tpu.vector_store %arg18[%c0_9, %c0_10], %10 {strides = array<i32>} : memref<8x50xf32, #tpu.memory_space<vmem>>, vector<1x50xf32>,
    %c1 = arith.constant 1 : index
    %12 = memref.load %arg1[%c1] : memref<8xi32, #tpu.memory_space<smem>>
    %c1_11 = arith.constant 1 : index
    %13 = memref.load %arg2[%c1_11] : memref<8xi32, #tpu.memory_space<smem>>
    %c1_12 = arith.constant 1 : index
    %14 = memref.load %arg3[%c1_12] : memref<8xi32, #tpu.memory_space<smem>>
    %15 = arith.index_cast %12 : i32 to index
    %c0_13 = arith.constant 0 : index
    %16 = vector.load %arg4[%15, %c0_13] : memref<20x30xf32, #tpu.memory_space<vmem>>, vector<1x30xf32>
    %c1_14 = arith.constant 1 : index
    %c0_15 = arith.constant 0 : index
    %17 = vector.load %arg16[%c1_14, %c0_15] : memref<8x30xf32, #tpu.memory_space<vmem>>, vector<1x30xf32>
    tpu.vector_store %arg16[%c1_14, %c0_15], %16 {strides = array<i32>} : memref<8x30xf32, #tpu.memory_space<vmem>>, vector<1x30xf32>,
    %18 = arith.index_cast %13 : i32 to index
    %c0_16 = arith.constant 0 : index
    %19 = vector.load %arg5[%18, %c0_16] : memref<40x50xf32, #tpu.memory_space<vmem>>, vector<1x50xf32>
    %c1_17 = arith.constant 1 : index
    %c0_18 = arith.constant 0 : index
    %20 = vector.load %arg17[%c1_17, %c0_18] : memref<8x50xf32, #tpu.memory_space<vmem>>, vector<1x50xf32>
    tpu.vector_store %arg17[%c1_17, %c0_18], %19 {strides = array<i32>} : memref<8x50xf32, #tpu.memory_space<vmem>>, vector<1x50xf32>,
    %21 = arith.index_cast %14 : i32 to index
    %c0_19 = arith.constant 0 : index
    %22 = vector.load %arg5[%21, %c0_19] : memref<40x50xf32, #tpu.memory_space<vmem>>, vector<1x50xf32>
    %c1_20 = arith.constant 1 : index
    %c0_21 = arith.constant 0 : index
    %23 = vector.load %arg18[%c1_20, %c0_21] : memref<8x50xf32, #tpu.memory_space<vmem>>, vector<1x50xf32>
    tpu.vector_store %arg18[%c1_20, %c0_21], %22 {strides = array<i32>} : memref<8x50xf32, #tpu.memory_space<vmem>>, vector<1x50xf32>,
    %c2 = arith.constant 2 : index
    %24 = memref.load %arg1[%c2] : memref<8xi32, #tpu.memory_space<smem>>
    %c2_22 = arith.constant 2 : index
    %25 = memref.load %arg2[%c2_22] : memref<8xi32, #tpu.memory_space<smem>>
    %c2_23 = arith.constant 2 : index
    %26 = memref.load %arg3[%c2_23] : memref<8xi32, #tpu.memory_space<smem>>
    %27 = arith.index_cast %24 : i32 to index
    %c0_24 = arith.constant 0 : index
    %28 = vector.load %arg4[%27, %c0_24] : memref<20x30xf32, #tpu.memory_space<vmem>>, vector<1x30xf32>
    %c2_25 = arith.constant 2 : index
    %c0_26 = arith.constant 0 : index
    %29 = vector.load %arg16[%c2_25, %c0_26] : memref<8x30xf32, #tpu.memory_space<vmem>>, vector<1x30xf32>
    tpu.vector_store %arg16[%c2_25, %c0_26], %28 {strides = array<i32>} : memref<8x30xf32, #tpu.memory_space<vmem>>, vector<1x30xf32>,
    %30 = arith.index_cast %25 : i32 to index
    %c0_27 = arith.constant 0 : index
    %31 = vector.load %arg5[%30, %c0_27] : memref<40x50xf32, #tpu.memory_space<vmem>>, vector<1x50xf32>
    %c2_28 = arith.constant 2 : index
    %c0_29 = arith.constant 0 : index
    %32 = vector.load %arg17[%c2_28, %c0_29] : memref<8x50xf32, #tpu.memory_space<vmem>>, vector<1x50xf32>
    tpu.vector_store %arg17[%c2_28, %c0_29], %31 {strides = array<i32>} : memref<8x50xf32, #tpu.memory_space<vmem>>, vector<1x50xf32>,
    %33 = arith.index_cast %26 : i32 to index
    %c0_30 = arith.constant 0 : index
    %34 = vector.load %arg5[%33, %c0_30] : memref<40x50xf32, #tpu.memory_space<vmem>>, vector<1x50xf32>
    %c2_31 = arith.constant 2 : index
    %c0_32 = arith.constant 0 : index
    %35 = vector.load %arg18[%c2_31, %c0_32] : memref<8x50xf32, #tpu.memory_space<vmem>>, vector<1x50xf32>
    tpu.vector_store %arg18[%c2_31, %c0_32], %34 {strides = array<i32>} : memref<8x50xf32, #tpu.memory_space<vmem>>, vector<1x50xf32>,
    %c3 = arith.constant 3 : index
    %36 = memref.load %arg1[%c3] : memref<8xi32, #tpu.memory_space<smem>>
    %c3_33 = arith.constant 3 : index
    %37 = memref.load %arg2[%c3_33] : memref<8xi32, #tpu.memory_space<smem>>
    %c3_34 = arith.constant 3 : index
    %38 = memref.load %arg3[%c3_34] : memref<8xi32, #tpu.memory_space<smem>>
    %39 = arith.index_cast %36 : i32 to index
    %c0_35 = arith.constant 0 : index
    %40 = vector.load %arg4[%39, %c0_35] : memref<20x30xf32, #tpu.memory_space<vmem>>, vector<1x30xf32>
    %c3_36 = arith.constant 3 : index
    %c0_37 = arith.constant 0 : index
    %41 = vector.load %arg16[%c3_36, %c0_37] : memref<8x30xf32, #tpu.memory_space<vmem>>, vector<1x30xf32>
    tpu.vector_store %arg16[%c3_36, %c0_37], %40 {strides = array<i32>} : memref<8x30xf32, #tpu.memory_space<vmem>>, vector<1x30xf32>,
    %42 = arith.index_cast %37 : i32 to index
    %c0_38 = arith.constant 0 : index
    %43 = vector.load %arg5[%42, %c0_38] : memref<40x50xf32, #tpu.memory_space<vmem>>, vector<1x50xf32>
    %c3_39 = arith.constant 3 : index
    %c0_40 = arith.constant 0 : index
    %44 = vector.load %arg17[%c3_39, %c0_40] : memref<8x50xf32, #tpu.memory_space<vmem>>, vector<1x50xf32>
    tpu.vector_store %arg17[%c3_39, %c0_40], %43 {strides = array<i32>} : memref<8x50xf32, #tpu.memory_space<vmem>>, vector<1x50xf32>,
    %45 = arith.index_cast %38 : i32 to index
    %c0_41 = arith.constant 0 : index
    %46 = vector.load %arg5[%45, %c0_41] : memref<40x50xf32, #tpu.memory_space<vmem>>, vector<1x50xf32>
    %c3_42 = arith.constant 3 : index
    %c0_43 = arith.constant 0 : index
    %47 = vector.load %arg18[%c3_42, %c0_43] : memref<8x50xf32, #tpu.memory_space<vmem>>, vector<1x50xf32>
    tpu.vector_store %arg18[%c3_42, %c0_43], %46 {strides = array<i32>} : memref<8x50xf32, #tpu.memory_space<vmem>>, vector<1x50xf32>,
    %c4 = arith.constant 4 : index
    %48 = memref.load %arg1[%c4] : memref<8xi32, #tpu.memory_space<smem>>
    %c4_44 = arith.constant 4 : index
    %49 = memref.load %arg2[%c4_44] : memref<8xi32, #tpu.memory_space<smem>>
    %c4_45 = arith.constant 4 : index
    %50 = memref.load %arg3[%c4_45] : memref<8xi32, #tpu.memory_space<smem>>
    %51 = arith.index_cast %48 : i32 to index
    %c0_46 = arith.constant 0 : index
    %52 = vector.load %arg4[%51, %c0_46] : memref<20x30xf32, #tpu.memory_space<vmem>>, vector<1x30xf32>
    %c4_47 = arith.constant 4 : index
    %c0_48 = arith.constant 0 : index
    %53 = vector.load %arg16[%c4_47, %c0_48] : memref<8x30xf32, #tpu.memory_space<vmem>>, vector<1x30xf32>
    tpu.vector_store %arg16[%c4_47, %c0_48], %52 {strides = array<i32>} : memref<8x30xf32, #tpu.memory_space<vmem>>, vector<1x30xf32>,
    %54 = arith.index_cast %49 : i32 to index
    %c0_49 = arith.constant 0 : index
    %55 = vector.load %arg5[%54, %c0_49] : memref<40x50xf32, #tpu.memory_space<vmem>>, vector<1x50xf32>
    %c4_50 = arith.constant 4 : index
    %c0_51 = arith.constant 0 : index
    %56 = vector.load %arg17[%c4_50, %c0_51] : memref<8x50xf32, #tpu.memory_space<vmem>>, vector<1x50xf32>
    tpu.vector_store %arg17[%c4_50, %c0_51], %55 {strides = array<i32>} : memref<8x50xf32, #tpu.memory_space<vmem>>, vector<1x50xf32>,
    %57 = arith.index_cast %50 : i32 to index
    %c0_52 = arith.constant 0 : index
    %58 = vector.load %arg5[%57, %c0_52] : memref<40x50xf32, #tpu.memory_space<vmem>>, vector<1x50xf32>
    %c4_53 = arith.constant 4 : index
    %c0_54 = arith.constant 0 : index
    %59 = vector.load %arg18[%c4_53, %c0_54] : memref<8x50xf32, #tpu.memory_space<vmem>>, vector<1x50xf32>
    tpu.vector_store %arg18[%c4_53, %c0_54], %58 {strides = array<i32>} : memref<8x50xf32, #tpu.memory_space<vmem>>, vector<1x50xf32>,
    %c5 = arith.constant 5 : index
    %60 = memref.load %arg1[%c5] : memref<8xi32, #tpu.memory_space<smem>>
    %c5_55 = arith.constant 5 : index
    %61 = memref.load %arg2[%c5_55] : memref<8xi32, #tpu.memory_space<smem>>
    %c5_56 = arith.constant 5 : index
    %62 = memref.load %arg3[%c5_56] : memref<8xi32, #tpu.memory_space<smem>>
    %63 = arith.index_cast %60 : i32 to index
    %c0_57 = arith.constant 0 : index
    %64 = vector.load %arg4[%63, %c0_57] : memref<20x30xf32, #tpu.memory_space<vmem>>, vector<1x30xf32>
    %c5_58 = arith.constant 5 : index
    %c0_59 = arith.constant 0 : index
    %65 = vector.load %arg16[%c5_58, %c0_59] : memref<8x30xf32, #tpu.memory_space<vmem>>, vector<1x30xf32>
    tpu.vector_store %arg16[%c5_58, %c0_59], %64 {strides = array<i32>} : memref<8x30xf32, #tpu.memory_space<vmem>>, vector<1x30xf32>,
    %66 = arith.index_cast %61 : i32 to index
    %c0_60 = arith.constant 0 : index
    %67 = vector.load %arg5[%66, %c0_60] : memref<40x50xf32, #tpu.memory_space<vmem>>, vector<1x50xf32>
    %c5_61 = arith.constant 5 : index
    %c0_62 = arith.constant 0 : index
    %68 = vector.load %arg17[%c5_61, %c0_62] : memref<8x50xf32, #tpu.memory_space<vmem>>, vector<1x50xf32>
    tpu.vector_store %arg17[%c5_61, %c0_62], %67 {strides = array<i32>} : memref<8x50xf32, #tpu.memory_space<vmem>>, vector<1x50xf32>,
    %69 = arith.index_cast %62 : i32 to index
    %c0_63 = arith.constant 0 : index
    %70 = vector.load %arg5[%69, %c0_63] : memref<40x50xf32, #tpu.memory_space<vmem>>, vector<1x50xf32>
    %c5_64 = arith.constant 5 : index
    %c0_65 = arith.constant 0 : index
    %71 = vector.load %arg18[%c5_64, %c0_65] : memref<8x50xf32, #tpu.memory_space<vmem>>, vector<1x50xf32>
    tpu.vector_store %arg18[%c5_64, %c0_65], %70 {strides = array<i32>} : memref<8x50xf32, #tpu.memory_space<vmem>>, vector<1x50xf32>,
    %c6 = arith.constant 6 : index
    %72 = memref.load %arg1[%c6] : memref<8xi32, #tpu.memory_space<smem>>
    %c6_66 = arith.constant 6 : index
    %73 = memref.load %arg2[%c6_66] : memref<8xi32, #tpu.memory_space<smem>>
    %c6_67 = arith.constant 6 : index
    %74 = memref.load %arg3[%c6_67] : memref<8xi32, #tpu.memory_space<smem>>
    %75 = arith.index_cast %72 : i32 to index
    %c0_68 = arith.constant 0 : index
    %76 = vector.load %arg4[%75, %c0_68] : memref<20x30xf32, #tpu.memory_space<vmem>>, vector<1x30xf32>
    %c6_69 = arith.constant 6 : index
    %c0_70 = arith.constant 0 : index
    %77 = vector.load %arg16[%c6_69, %c0_70] : memref<8x30xf32, #tpu.memory_space<vmem>>, vector<1x30xf32>
    tpu.vector_store %arg16[%c6_69, %c0_70], %76 {strides = array<i32>} : memref<8x30xf32, #tpu.memory_space<vmem>>, vector<1x30xf32>,
    %78 = arith.index_cast %73 : i32 to index
    %c0_71 = arith.constant 0 : index
    %79 = vector.load %arg5[%78, %c0_71] : memref<40x50xf32, #tpu.memory_space<vmem>>, vector<1x50xf32>
    %c6_72 = arith.constant 6 : index
    %c0_73 = arith.constant 0 : index
    %80 = vector.load %arg17[%c6_72, %c0_73] : memref<8x50xf32, #tpu.memory_space<vmem>>, vector<1x50xf32>
    tpu.vector_store %arg17[%c6_72, %c0_73], %79 {strides = array<i32>} : memref<8x50xf32, #tpu.memory_space<vmem>>, vector<1x50xf32>,
    %81 = arith.index_cast %74 : i32 to index
    %c0_74 = arith.constant 0 : index
    %82 = vector.load %arg5[%81, %c0_74] : memref<40x50xf32, #tpu.memory_space<vmem>>, vector<1x50xf32>
    %c6_75 = arith.constant 6 : index
    %c0_76 = arith.constant 0 : index
    %83 = vector.load %arg18[%c6_75, %c0_76] : memref<8x50xf32, #tpu.memory_space<vmem>>, vector<1x50xf32>
    tpu.vector_store %arg18[%c6_75, %c0_76], %82 {strides = array<i32>} : memref<8x50xf32, #tpu.memory_space<vmem>>, vector<1x50xf32>,
    %c7 = arith.constant 7 : index
    %84 = memref.load %arg1[%c7] : memref<8xi32, #tpu.memory_space<smem>>
    %c7_77 = arith.constant 7 : index
    %85 = memref.load %arg2[%c7_77] : memref<8xi32, #tpu.memory_space<smem>>
    %c7_78 = arith.constant 7 : index
    %86 = memref.load %arg3[%c7_78] : memref<8xi32, #tpu.memory_space<smem>>
    %87 = arith.index_cast %84 : i32 to index
    %c0_79 = arith.constant 0 : index
    %88 = vector.load %arg4[%87, %c0_79] : memref<20x30xf32, #tpu.memory_space<vmem>>, vector<1x30xf32>
    %c7_80 = arith.constant 7 : index
    %c0_81 = arith.constant 0 : index
    %89 = vector.load %arg16[%c7_80, %c0_81] : memref<8x30xf32, #tpu.memory_space<vmem>>, vector<1x30xf32>
    tpu.vector_store %arg16[%c7_80, %c0_81], %88 {strides = array<i32>} : memref<8x30xf32, #tpu.memory_space<vmem>>, vector<1x30xf32>,
    %90 = arith.index_cast %85 : i32 to index
    %c0_82 = arith.constant 0 : index
    %91 = vector.load %arg5[%90, %c0_82] : memref<40x50xf32, #tpu.memory_space<vmem>>, vector<1x50xf32>
    %c7_83 = arith.constant 7 : index
    %c0_84 = arith.constant 0 : index
    %92 = vector.load %arg17[%c7_83, %c0_84] : memref<8x50xf32, #tpu.memory_space<vmem>>, vector<1x50xf32>
    tpu.vector_store %arg17[%c7_83, %c0_84], %91 {strides = array<i32>} : memref<8x50xf32, #tpu.memory_space<vmem>>, vector<1x50xf32>,
    %93 = arith.index_cast %86 : i32 to index
    %c0_85 = arith.constant 0 : index
    %94 = vector.load %arg5[%93, %c0_85] : memref<40x50xf32, #tpu.memory_space<vmem>>, vector<1x50xf32>
    %c7_86 = arith.constant 7 : index
    %c0_87 = arith.constant 0 : index
    %95 = vector.load %arg18[%c7_86, %c0_87] : memref<8x50xf32, #tpu.memory_space<vmem>>, vector<1x50xf32>
    tpu.vector_store %arg18[%c7_86, %c0_87], %94 {strides = array<i32>} : memref<8x50xf32, #tpu.memory_space<vmem>>, vector<1x50xf32>,
    %c0_88 = arith.constant 0 : index
    %c0_89 = arith.constant 0 : index
    %96 = vector.load %arg16[%c0_88, %c0_89] : memref<8x30xf32, #tpu.memory_space<vmem>>, vector<8x30xf32>
    %c0_90 = arith.constant 0 : index
    %c0_91 = arith.constant 0 : index
    %97 = vector.load %arg17[%c0_90, %c0_91] : memref<8x50xf32, #tpu.memory_space<vmem>>, vector<8x50xf32>
    %c0_92 = arith.constant 0 : index
    %c0_93 = arith.constant 0 : index
    %98 = vector.load %arg18[%c0_92, %c0_93] : memref<8x50xf32, #tpu.memory_space<vmem>>, vector<8x50xf32>
    %c0_94 = arith.constant 0 : index
    %c0_95 = arith.constant 0 : index
    %99 = vector.load %arg8[%c0_94, %c0_95] : memref<1x60xf32, #tpu.memory_space<vmem>>, vector<1x60xf32>
    %c0_96 = arith.constant 0 : index
    %c0_97 = arith.constant 0 : index
    %100 = vector.load %arg6[%c0_96, %c0_97] : memref<30x60xf32, #tpu.memory_space<vmem>>, vector<30x60xf32>
    %cst = arith.constant dense<0.000000e+00> : vector<8x60xf32>
    %101 = tpu.matmul %96, %100, %cst {dimension_numbers = #tpu.dot_dimension_numbers<[1], [0], [0], [1], [0, 0, 1, 1], [], []>} : vector<8x30xf32>, vector<30x60xf32>, vector<8x60xf32> -> vector<8x60xf32>
    %c0_98 = arith.constant 0 : index
    %c0_99 = arith.constant 0 : index
    %102 = vector.load %arg7[%c0_98, %c0_99] : memref<50x60xf32, #tpu.memory_space<vmem>>, vector<50x60xf32>
    %cst_100 = arith.constant dense<0.000000e+00> : vector<8x60xf32>
    %103 = tpu.matmul %97, %102, %cst_100 {dimension_numbers = #tpu.dot_dimension_numbers<[1], [0], [0], [1], [0, 0, 1, 1], [], []>} : vector<8x50xf32>, vector<50x60xf32>, vector<8x60xf32> -> vector<8x60xf32>
    %104 = arith.addf %101, %103 : vector<8x60xf32>
    %105 = vector.broadcast %99 : vector<1x60xf32> to vector<8x60xf32>
    %106 = arith.addf %104, %105 : vector<8x60xf32>
    %cst_101 = arith.constant 0.000000e+00 : f32
    %107 = vector.broadcast %cst_101 : f32 to vector<8x60xf32>
    %108 = arith.maximumf %106, %107 : vector<8x60xf32>
    %c0_102 = arith.constant 0 : index
    %c0_103 = arith.constant 0 : index
    %109 = vector.load %arg7[%c0_102, %c0_103] : memref<50x60xf32, #tpu.memory_space<vmem>>, vector<50x60xf32>
    %cst_104 = arith.constant dense<0.000000e+00> : vector<8x60xf32>
    %110 = tpu.matmul %98, %109, %cst_104 {dimension_numbers = #tpu.dot_dimension_numbers<[1], [0], [0], [1], [0, 0, 1, 1], [], []>} : vector<8x50xf32>, vector<50x60xf32>, vector<8x60xf32> -> vector<8x60xf32>
    %111 = arith.addf %101, %110 : vector<8x60xf32>
    %112 = vector.broadcast %99 : vector<1x60xf32> to vector<8x60xf32>
    %113 = arith.addf %111, %112 : vector<8x60xf32>
    %cst_105 = arith.constant 0.000000e+00 : f32
    %114 = vector.broadcast %cst_105 : f32 to vector<8x60xf32>
    %115 = arith.maximumf %113, %114 : vector<8x60xf32>
    %c0_106 = arith.constant 0 : index
    %c0_107 = arith.constant 0 : index
    %116 = vector.load %arg9[%c0_106, %c0_107] : memref<60x30xf32, #tpu.memory_space<vmem>>, vector<60x30xf32>
    %c0_108 = arith.constant 0 : index
    %c0_109 = arith.constant 0 : index
    %117 = vector.load %arg10[%c0_108, %c0_109] : memref<1x30xf32, #tpu.memory_space<vmem>>, vector<1x30xf32>
    %c0_110 = arith.constant 0 : index
    %c0_111 = arith.constant 0 : index
    %118 = vector.load %arg11[%c0_110, %c0_111] : memref<30x10xf32, #tpu.memory_space<vmem>>, vector<30x10xf32>
    %c0_112 = arith.constant 0 : index
    %c0_113 = arith.constant 0 : index
    %119 = vector.load %arg12[%c0_112, %c0_113] : memref<1x10xf32, #tpu.memory_space<vmem>>, vector<1x10xf32>
    %c0_114 = arith.constant 0 : index
    %c0_115 = arith.constant 0 : index
    %120 = vector.load %arg13[%c0_114, %c0_115] : memref<1x10xf32, #tpu.memory_space<vmem>>, vector<1x10xf32>
    %c0_116 = arith.constant 0 : index
    %c0_117 = arith.constant 0 : index
    %121 = vector.load %arg14[%c0_116, %c0_117] : memref<1x1xf32, #tpu.memory_space<vmem>>, vector<1x1xf32>
    %cst_118 = arith.constant dense<0.000000e+00> : vector<8x30xf32>
    %122 = tpu.matmul %108, %116, %cst_118 {dimension_numbers = #tpu.dot_dimension_numbers<[1], [0], [0], [1], [0, 0, 1, 1], [], []>} : vector<8x60xf32>, vector<60x30xf32>, vector<8x30xf32> -> vector<8x30xf32>
    %123 = vector.broadcast %117 : vector<1x30xf32> to vector<8x30xf32>
    %124 = arith.addf %122, %123 : vector<8x30xf32>
    %cst_119 = arith.constant 0.000000e+00 : f32
    %125 = vector.broadcast %cst_119 : f32 to vector<8x30xf32>
    %126 = arith.maximumf %124, %125 : vector<8x30xf32>
    %cst_120 = arith.constant dense<0.000000e+00> : vector<8x10xf32>
    %127 = tpu.matmul %126, %118, %cst_120 {dimension_numbers = #tpu.dot_dimension_numbers<[1], [0], [0], [1], [0, 0, 1, 1], [], []>} : vector<8x30xf32>, vector<30x10xf32>, vector<8x10xf32> -> vector<8x10xf32>
    %128 = vector.broadcast %119 : vector<1x10xf32> to vector<8x10xf32>
    %129 = arith.addf %127, %128 : vector<8x10xf32>
    %cst_121 = arith.constant 0.000000e+00 : f32
    %130 = vector.broadcast %cst_121 : f32 to vector<8x10xf32>
    %131 = arith.maximumf %129, %130 : vector<8x10xf32>
    %132 = vector.broadcast %120 : vector<1x10xf32> to vector<8x10xf32>
    %133 = arith.mulf %131, %132 : vector<8x10xf32>
    %cst_122 = arith.constant dense<0.000000e+00> : vector<8xf32>
    %134 = vector.multi_reduction <add>, %133, %cst_122 [1] : vector<8x10xf32> to vector<8xf32>
    %135 = vector.shape_cast %134 : vector<8xf32> to vector<8x1xf32>
    %136 = vector.broadcast %121 : vector<1x1xf32> to vector<8x1xf32>
    %137 = arith.addf %135, %136 : vector<8x1xf32>
    %138 = vector.shape_cast %137 : vector<8x1xf32> to vector<8x1xf32>
    %139 = vector.broadcast %138 : vector<8x1xf32> to vector<8x128xf32>
    %c0_123 = arith.constant 0 : index
    %c0_124 = arith.constant 0 : index
    %c0_125 = arith.constant 0 : index
    %140 = vector.load %arg15[%c0_123, %c0_124, %c0_125] : memref<2x8x128xf32, #tpu.memory_space<vmem>>, vector<1x8x128xf32>
    %141 = vector.shape_cast %140 : vector<1x8x128xf32> to vector<8x128xf32>
    %142 = vector.shape_cast %139 : vector<8x128xf32> to vector<1x8x128xf32>
    tpu.vector_store %arg15[%c0_123, %c0_124, %c0_125], %142 {strides = array<i32>} : memref<2x8x128xf32, #tpu.memory_space<vmem>>, vector<1x8x128xf32>,
    %cst_126 = arith.constant dense<0.000000e+00> : vector<8x30xf32>
    %143 = tpu.matmul %115, %116, %cst_126 {dimension_numbers = #tpu.dot_dimension_numbers<[1], [0], [0], [1], [0, 0, 1, 1], [], []>} : vector<8x60xf32>, vector<60x30xf32>, vector<8x30xf32> -> vector<8x30xf32>
    %144 = vector.broadcast %117 : vector<1x30xf32> to vector<8x30xf32>
    %145 = arith.addf %143, %144 : vector<8x30xf32>
    %cst_127 = arith.constant 0.000000e+00 : f32
    %146 = vector.broadcast %cst_127 : f32 to vector<8x30xf32>
    %147 = arith.maximumf %145, %146 : vector<8x30xf32>
    %cst_128 = arith.constant dense<0.000000e+00> : vector<8x10xf32>
    %148 = tpu.matmul %147, %118, %cst_128 {dimension_numbers = #tpu.dot_dimension_numbers<[1], [0], [0], [1], [0, 0, 1, 1], [], []>} : vector<8x30xf32>, vector<30x10xf32>, vector<8x10xf32> -> vector<8x10xf32>
    %149 = vector.broadcast %119 : vector<1x10xf32> to vector<8x10xf32>
    %150 = arith.addf %148, %149 : vector<8x10xf32>
    %cst_129 = arith.constant 0.000000e+00 : f32
    %151 = vector.broadcast %cst_129 : f32 to vector<8x10xf32>
    %152 = arith.maximumf %150, %151 : vector<8x10xf32>
    %153 = vector.broadcast %120 : vector<1x10xf32> to vector<8x10xf32>
    %154 = arith.mulf %152, %153 : vector<8x10xf32>
    %cst_130 = arith.constant dense<0.000000e+00> : vector<8xf32>
    %155 = vector.multi_reduction <add>, %154, %cst_130 [1] : vector<8x10xf32> to vector<8xf32>
    %156 = vector.shape_cast %155 : vector<8xf32> to vector<8x1xf32>
    %157 = vector.broadcast %121 : vector<1x1xf32> to vector<8x1xf32>
    %158 = arith.addf %156, %157 : vector<8x1xf32>
    %159 = vector.shape_cast %158 : vector<8x1xf32> to vector<8x1xf32>
    %160 = vector.broadcast %159 : vector<8x1xf32> to vector<8x128xf32>
    %c1_131 = arith.constant 1 : index
    %c0_132 = arith.constant 0 : index
    %c0_133 = arith.constant 0 : index
    %161 = vector.load %arg15[%c1_131, %c0_132, %c0_133] : memref<2x8x128xf32, #tpu.memory_space<vmem>>, vector<1x8x128xf32>
    %162 = vector.shape_cast %161 : vector<1x8x128xf32> to vector<8x128xf32>
    %163 = vector.shape_cast %160 : vector<8x128xf32> to vector<1x8x128xf32>
    tpu.vector_store %arg15[%c1_131, %c0_132, %c0_133], %163 {strides = array<i32>} : memref<2x8x128xf32, #tpu.memory_space<vmem>>, vector<1x8x128xf32>,
    return
  }
  func.func @transform_0(%arg0: i32, %arg1: memref<8xi32, #tpu.memory_space<smem>>, %arg2: memref<8xi32, #tpu.memory_space<smem>>, %arg3: memref<8xi32, #tpu.memory_space<smem>>) -> (i32, i32) {
    %c0_i32 = arith.constant 0 : i32
    %c0_i32_0 = arith.constant 0 : i32
    %c0_i32_1 = arith.constant 0 : i32
    return %c0_i32, %c0_i32_0 : i32, i32
  }
  func.func @transform_1(%arg0: i32, %arg1: memref<8xi32, #tpu.memory_space<smem>>, %arg2: memref<8xi32, #tpu.memory_space<smem>>, %arg3: memref<8xi32, #tpu.memory_space<smem>>) -> (i32, i32) {
    %c0_i32 = arith.constant 0 : i32
    %c0_i32_0 = arith.constant 0 : i32
    %c0_i32_1 = arith.constant 0 : i32
    return %c0_i32, %c0_i32_0 : i32, i32
  }
  func.func @transform_2(%arg0: i32, %arg1: memref<8xi32, #tpu.memory_space<smem>>, %arg2: memref<8xi32, #tpu.memory_space<smem>>, %arg3: memref<8xi32, #tpu.memory_space<smem>>) -> (i32, i32) {
    %c0_i32 = arith.constant 0 : i32
    %c0_i32_0 = arith.constant 0 : i32
    %c0_i32_1 = arith.constant 0 : i32
    return %c0_i32, %c0_i32_0 : i32, i32
  }
  func.func @transform_3(%arg0: i32, %arg1: memref<8xi32, #tpu.memory_space<smem>>, %arg2: memref<8xi32, #tpu.memory_space<smem>>, %arg3: memref<8xi32, #tpu.memory_space<smem>>) -> (i32, i32) {
    %c0_i32 = arith.constant 0 : i32
    %c0_i32_0 = arith.constant 0 : i32
    %c0_i32_1 = arith.constant 0 : i32
    return %c0_i32, %c0_i32_0 : i32, i32
  }
  func.func @transform_4(%arg0: i32, %arg1: memref<8xi32, #tpu.memory_space<smem>>, %arg2: memref<8xi32, #tpu.memory_space<smem>>, %arg3: memref<8xi32, #tpu.memory_space<smem>>) -> (i32, i32) {
    %c0_i32 = arith.constant 0 : i32
    %c0_i32_0 = arith.constant 0 : i32
    %c0_i32_1 = arith.constant 0 : i32
    return %c0_i32, %c0_i32_0 : i32, i32
  }
  func.func @transform_5(%arg0: i32, %arg1: memref<8xi32, #tpu.memory_space<smem>>, %arg2: memref<8xi32, #tpu.memory_space<smem>>, %arg3: memref<8xi32, #tpu.memory_space<smem>>) -> (i32, i32) {
    %c0_i32 = arith.constant 0 : i32
    %c0_i32_0 = arith.constant 0 : i32
    %c0_i32_1 = arith.constant 0 : i32
    return %c0_i32, %c0_i32_0 : i32, i32
  }
  func.func @transform_6(%arg0: i32, %arg1: memref<8xi32, #tpu.memory_space<smem>>, %arg2: memref<8xi32, #tpu.memory_space<smem>>, %arg3: memref<8xi32, #tpu.memory_space<smem>>) -> (i32, i32) {
    %c0_i32 = arith.constant 0 : i32
    %c0_i32_0 = arith.constant 0 : i32
    %c0_i32_1 = arith.constant 0 : i32
    return %c0_i32, %c0_i32_0 : i32, i32
  }
  func.func @transform_7(%arg0: i32, %arg1: memref<8xi32, #tpu.memory_space<smem>>, %arg2: memref<8xi32, #tpu.memory_space<smem>>, %arg3: memref<8xi32, #tpu.memory_space<smem>>) -> (i32, i32) {
    %c0_i32 = arith.constant 0 : i32
    %c0_i32_0 = arith.constant 0 : i32
    %c0_i32_1 = arith.constant 0 : i32
    return %c0_i32, %c0_i32_0 : i32, i32
  }
  func.func @transform_8(%arg0: i32, %arg1: memref<8xi32, #tpu.memory_space<smem>>, %arg2: memref<8xi32, #tpu.memory_space<smem>>, %arg3: memref<8xi32, #tpu.memory_space<smem>>) -> (i32, i32) {
    %c0_i32 = arith.constant 0 : i32
    %c0_i32_0 = arith.constant 0 : i32
    %c0_i32_1 = arith.constant 0 : i32
    return %c0_i32, %c0_i32_0 : i32, i32
  }
  func.func @transform_9(%arg0: i32, %arg1: memref<8xi32, #tpu.memory_space<smem>>, %arg2: memref<8xi32, #tpu.memory_space<smem>>, %arg3: memref<8xi32, #tpu.memory_space<smem>>) -> (i32, i32) {
    %c0_i32 = arith.constant 0 : i32
    %c0_i32_0 = arith.constant 0 : i32
    %c0_i32_1 = arith.constant 0 : i32
    return %c0_i32, %c0_i32_0 : i32, i32
  }
  func.func @transform_10(%arg0: i32, %arg1: memref<8xi32, #tpu.memory_space<smem>>, %arg2: memref<8xi32, #tpu.memory_space<smem>>, %arg3: memref<8xi32, #tpu.memory_space<smem>>) -> (i32, i32) {
    %c0_i32 = arith.constant 0 : i32
    %c0_i32_0 = arith.constant 0 : i32
    %c0_i32_1 = arith.constant 0 : i32
    return %c0_i32, %c0_i32_0 : i32, i32
  }
  func.func @transform_11(%arg0: i32, %arg1: memref<8xi32, #tpu.memory_space<smem>>, %arg2: memref<8xi32, #tpu.memory_space<smem>>, %arg3: memref<8xi32, #tpu.memory_space<smem>>) -> (i32, i32, i32) {
    %c0_i32 = arith.constant 0 : i32
    %c0_i32_0 = arith.constant 0 : i32
    %c0_i32_1 = arith.constant 0 : i32
    %c0_i32_2 = arith.constant 0 : i32
    return %c0_i32, %c0_i32_0, %c0_i32_1 : i32, i32, i32
  }
}

</mosaic_0001>

<bundles_post_ra>
// kernel: net_forward.1
= control target key start
LH: loop header
LB: loop body
LE: loop exit
PB: predicated region body
PF: predicated region fallthrough
CT: control target
= control target key end

     0   :  { %s1718_s0 = inlined_call_operand.vmem [shape: s32[8], index: 0, kind: input, shape index: {}]   ;;  %s1719_s3 = inlined_call_operand.hbm [shape: f32[20,30], index: 3, kind: input, shape index: {}]   ;;  %s1720_s4 = inlined_call_operand.vmem [shape: f32[40,50], index: 4, kind: input, shape index: {}]   ;;  %s1721_s5 = inlined_call_operand.vmem [shape: f32[30,60], index: 5, kind: input, shape index: {}]   ;;  %s1722_s6 = inlined_call_operand.vmem [shape: f32[50,60], index: 6, kind: input, shape index: {}]   ;;  %s1723_s7 = inlined_call_operand.hbm [shape: f32[1,60], index: 7, kind: input, shape index: {}]   ;;  %s1724_s8 = inlined_call_operand.vmem [shape: f32[60,30], index: 8, kind: input, shape index: {}]   ;;  %s1725_s9 = inlined_call_operand.hbm [shape: f32[1,30], index: 9, kind: input, shape index: {}]   ;;  %s1726_s10 = inlined_call_operand.vmem [shape: f32[30,10], index: 10, kind: input, shape index: {}]   ;;  %s1727_s11 = inlined_call_operand.hbm [shape: f32[1,10], index: 11, kind: input, shape index: {}]   ;;  %s1728_s12 = inlined_call_operand.vmem [shape: f32[1,10], index: 12, kind: input, shape index: {}]   ;;  %s1729_s14 = inlined_call_operand.vmem [shape: f32[2,8,128], index: 14, kind: output, shape index: {}]   ;;  %s1730_s1 = inlined_call_operand.vmem [shape: s32[8], index: 1, kind: input, shape index: {}]   ;;  %s1731_s13 = inlined_call_operand.<no memory space> [shape: f32[1,1], index: 13, kind: input, shape index: {}]   ;;  %s1732_s2 = inlined_call_operand.vmem [shape: s32[8], index: 2, kind: input, shape index: {}]  }
   0x1   :  { %s19_s15 = sshll.u32 %s1718_s0, 4  ;;  %s23_s18 = sshll.u32 %s1730_s1, 4  ;;  %v31_v0 = vstv %s1731_s13  ;;  %s20_s15 = int_to_ptr.vmem [resolvable:$true] %s19_s15  ;;  %s24_s18 = int_to_ptr.vmem [resolvable:$true] %s23_s18 }
   0x2   :  { %32 = vst [vmem:[#allocation9] sm:$0x1] %v31_v0  ;;  %s1135_s21 = scalar_lea.vmem %s20_s15, 16  ;;  %p1140_p1 = scmp.lt.s32.totalorder %s20_s15, %s20_s15 }
   0x3   :  { %p1136_p0 = scmp.ne.s32.totalorder %s20_s15, %s1135_s21  ;;  %p1141_p2 = scmp.lt.s32.totalorder %s1135_s21, %s1135_s21 }
   0x5   :  { %p1142_p3 = por %p1141_p2, %p1140_p1 }
   0x7   :  { %p1143_p4 = pnand %p1142_p3, %p1136_p0 }
   0x9   :  { %1146 = shalt.err (!%p1143_p4)  }
   0xa   :  { %s1267_s22 = smov [#allocation6]   ;;  %s1147_s0 = scalar_lea.vmem %s24_s18, 16 }
   0xb   :  { %22 = dma.vmem_to_smem %s20_s15, 16, %s1267_s22, [#allocation5] }
   0xc   :  { %p1148_p5 = scmp.ne.s32.totalorder %s24_s18, %s1147_s0  ;;  %p1152_p6 = scmp.lt.s32.totalorder %s24_s18, %s24_s18 }
   0xd   :  { %p1153_p7 = scmp.lt.s32.totalorder %s1147_s0, %s1147_s0 }
   0xf   :  { %p1154_p8 = por %p1153_p7, %p1152_p6 }
  0x11   :  { %p1155_p9 = pnand %p1154_p8, %p1148_p5 }
  0x13   :  { %1158 = shalt.err (!%p1155_p9)  }
  0x14   :  { %s1268_s1 = smov [#allocation7]   ;;  %s27_s24 = sshll.u32 %s1732_s2, 4  ;;  %s28_s24 = int_to_ptr.vmem [resolvable:$true] %s27_s24 }
  0x15   :  { %26 = dma.vmem_to_smem %s24_s18, 16, %s1268_s1, [#allocation5] }
  0x16   :  { %s1159_s25 = scalar_lea.vmem %s28_s24, 16  ;;  %p1164_p11 = scmp.lt.s32.totalorder %s28_s24, %s28_s24 }
  0x17   :  { %p1160_p10 = scmp.ne.s32.totalorder %s28_s24, %s1159_s25  ;;  %p1165_p12 = scmp.lt.s32.totalorder %s1159_s25, %s1159_s25 }
  0x19   :  { %p1166_p13 = por %p1165_p12, %p1164_p11 }
  0x1b   :  { %p1167_p0 = pnand %p1166_p13, %p1160_p10 }
  0x1d   :  { %1170 = shalt.err (!%p1167_p0)  }
  0x1e   :  { %s1269_s26 = smov [#allocation8]  }
  0x1f   :  { %30 = dma.vmem_to_smem %s28_s24, 16, %s1269_s26, [#allocation5] }
  0x20   :  { %1259 = dma.done.wait [#allocation5], 48 }
  0x21   :  { %1260 = vsyncadd [#allocation5], 4294967248 }
  0x22   :  { %34 = sfence }
  0x23   :  { %35 = vsyncpa [#allocation11], 0 }
  0x24   :  { %36 = vsyncpa [#allocation13], 0 }
  0x25   :  { %37 = vsyncpa [#allocation16], 0  ;;  %s1270_s27 = smov [#allocation12]   ;;  %s1271_s29 = smov [#allocation10]  }
  0x26   :  { %s62_s28 = sshll.u32 %s1270_s27, 4  ;;  %s43_s2 = sshll.u32 %s1271_s29, 4  ;;  %s63_s28 = int_to_ptr.vmem [resolvable:$true] %s62_s28  ;;  %s1368_s2 = int_to_ptr.vmem [resolvable:$true] %s43_s2 }
  0x27   :  { %s1171_s16 = scalar_lea.hbm %s1723_s7, 16 }
  0x28   :  { %p1172_p1 = scmp.ne.s32.totalorder %s1723_s7, %s1171_s16  ;;  %p1175_p2 = scmp.lt.u32.totalorder %s1171_s16, %s1723_s7 }
  0x2a   :  { %p1177_p3 = pnand %p1175_p2, %p1172_p1 }
  0x2c   :  { %1180 = shalt.err (!%p1177_p3)
}
  0x2d   :  { %s1181_s21 = scalar_lea.vmem %s63_s28, 16  ;;  %s1185_s22 = scalar_lea.vmem %s63_s28, 32 }
  0x2e   :  { %p1182_p4 = scmp.ne.s32.totalorder %s63_s28, %s1181_s21  ;;  %p1186_p5 = scmp.lt.s32.totalorder %s63_s28, %s63_s28 }
  0x2f   :  { %p1187_p6 = scmp.lt.s32.totalorder %s1185_s22, %s1181_s21 }
  0x31   :  { %p1188_p7 = por %p1187_p6, %p1186_p5 }
  0x33   :  { %p1189_p8 = pnand %p1188_p7, %p1182_p4 }
  0x35   :  { %1192 = shalt.err (!%p1189_p8)
}
  0x36   :  { %65 = dma.hbm_to_vmem [thread:$0]  %s1723_s7, 16, %s63_s28, [#allocation13]  }
  0x37   :  { %s1193_s24 = scalar_lea.hbm %s1719_s3, 384 }
  0x38   :  { %p1194_p9 = scmp.ne.s32.totalorder %s1719_s3, %s1193_s24  ;;  %p1197_p10 = scmp.lt.u32.totalorder %s1193_s24, %s1719_s3 }
  0x3a   :  { %p1199_p11 = pnand %p1197_p10, %p1194_p9 }
  0x3c   :  { %1202 = shalt.err (!%p1199_p11)
}
  0x3d   :  { %s1203_s30 = scalar_lea.vmem %s1368_s2, 384  ;;  %p1208_p13 = scmp.lt.s32.totalorder %s1368_s2, %s1368_s2 }
  0x3e   :  { %p1204_p12 = scmp.ne.s32.totalorder %s1368_s2, %s1203_s30  ;;  %p1209_p0 = scmp.lt.s32.totalorder %s1203_s30, %s1203_s30 }
  0x40   :  { %p1210_p1 = por %p1209_p0, %p1208_p13 }
  0x42   :  { %p1211_p2 = pnand %p1210_p1, %p1204_p12 }
  0x44   :  { %1214 = shalt.err (!%p1211_p2)
}
  0x45   :  { %s1272_s7 = smov 128   ;;  %s1273_s28 = smov 8  }
  0x46   :  { %49 = dma.hbm_to_vmem [thread:$0]  %s1719_s3, 384, %s1368_s2, [#allocation11], %s1272_s7, %s1272_s7, %s1273_s28  }
  0x47   :  { %s1274_s17 = smov [#allocation14]   ;;  %s1275_s19 = smov [#allocation15]  }
  0x48   :  { %s74_s18 = sshll.u32 %s1274_s17, 4  ;;  %s86_s20 = sshll.u32 %s1275_s19, 4  ;;  %s75_s18 = int_to_ptr.vmem [resolvable:$true] %s74_s18  ;;  %s87_s20 = int_to_ptr.vmem [resolvable:$true] %s86_s20 }
  0x49   :  { %s1215_s0 = scalar_lea.hbm %s1725_s9, 16 }
  0x4a   :  { %p1216_p3 = scmp.ne.s32.totalorder %s1725_s9, %s1215_s0  ;;  %p1219_p4 = scmp.lt.u32.totalorder %s1215_s0, %s1725_s9 }
  0x4c   :  { %p1221_p5 = pnand %p1219_p4, %p1216_p3 }
  0x4e   :  { %1224 = shalt.err (!%p1221_p5)
}
  0x4f   :  { %s1225_s3 = scalar_lea.vmem %s75_s18, 16  ;;  %s1229_s2 = scalar_lea.vmem %s75_s18, 32 }
  0x50   :  { %p1226_p6 = scmp.ne.s32.totalorder %s75_s18, %s1225_s3  ;;  %p1230_p7 = scmp.lt.s32.totalorder %s75_s18, %s75_s18 }
  0x51   :  { %p1231_p8 = scmp.lt.s32.totalorder %s1229_s2, %s1225_s3 }
  0x53   :  { %p1232_p9 = por %p1231_p8, %p1230_p7 }
  0x55   :  { %p1233_p10 = pnand %p1232_p9, %p1226_p6 }
  0x57   :  { %1236 = shalt.err (!%p1233_p10)
}
  0x58   :  { %77 = dma.hbm_to_vmem [thread:$0]  %s1725_s9, 16, %s75_s18, [#allocation13]  }
  0x59   :  { %s1237_s30 = scalar_lea.hbm %s1727_s11, 16 }
  0x5a   :  { %p1238_p11 = scmp.ne.s32.totalorder %s1727_s11, %s1237_s30  ;;  %p1241_p12 = scmp.lt.u32.totalorder %s1237_s30, %s1727_s11 }
  0x5c   :  { %p1243_p13 = pnand %p1241_p12, %p1238_p11 }
  0x5e   :  { %1246 = shalt.err (!%p1243_p13)
}
  0x5f   :  { %s1247_s17 = scalar_lea.vmem %s87_s20, 16  ;;  %s1251_s19 = scalar_lea.vmem %s87_s20, 32 }
  0x60   :  { %p1248_p0 = scmp.ne.s32.totalorder %s87_s20, %s1247_s17  ;;  %p1252_p1 = scmp.lt.s32.totalorder %s87_s20, %s87_s20 }
  0x61   :  { %p1253_p2 = scmp.lt.s32.totalorder %s1251_s19, %s1247_s17 }
  0x63   :  { %p1254_p3 = por %p1253_p2, %p1252_p1 }
  0x65   :  { %p1255_p4 = pnand %p1254_p3, %p1248_p0 }
  0x67   :  { %1258 = shalt.err (!%p1255_p4)
}
  0x68   :  { %89 = dma.hbm_to_vmem [thread:$0]  %s1727_s11, 16, %s87_s20, [#allocation16]  }
  0x69   :  { %1261 = dma.done.wait [#allocation11], 384  }
  0x6a   :  { %1262 = vsyncadd [#allocation11], 4294966912 }
  0x6b   :  { %1263 = dma.done.wait [#allocation13], 32  }
  0x6c   :  { %1264 = vsyncadd [#allocation13], 4294967264 }
  0x6d   :  { %1265 = dma.done.wait [#allocation16], 16  }
  0x6e   :  { %1266 = vsyncadd [#allocation16], 4294967280  ;;  %v1276_v1 = vmov 0.0|0.0   ;;  %s1425_s21 = sld [smem:[#allocation6]]  ;;  %vm1277_vm0 = vmmov 0   ;;  %v1278_v2 = vmov 0.0  }
  0x6f   :  { %1054 = vmatprep.subr.bf16.mxu0 %v1276_v1  ;;  %1061 = vmatprep.subr.bf16.mxu1 %v1276_v1  ;;  %s1429_s22 = sld [smem:[#allocation6 + $0x1]]  ;;  %s1431_s11 = sld [smem:[#allocation6 + $0x2]]  ;;  %vm216_vm1 = vcmask 1045504   ;;  %vm111_vm2 = vcmask 237568   ;;  %v208_v3 = vld [vmem:[%s1721_s5] sm:$0xff]  ;;  %v209_v4 = vld [vmem:[%s1721_s5 + $0x8] sm:$0xff] }
  0x70   :  { %957 = vmatprep.mubr.msk.f32.mxu0 %vm1277_vm0, %v1278_v2  ;;  %974 = vmatprep.mubr.msk.f32.mxu1 %vm1277_vm0, %v1278_v2  ;;  %s1435_s20 = sld [smem:[#allocation6 + $0x3]]  ;;  %s1437_s0 = sld [smem:[#allocation6 + $0x4]]  ;;  %v290_v5 = vld [vmem:[%s1722_s6] sm:$0xff]  ;;  %v1055_v6 = vpack.c.bf16 %v209_v4, %v208_v3  ;;  %v291_v7 = vld [vmem:[%s1722_s6 + $0x8] sm:$0xff]  ;;  %v210_v8 = vld [vmem:[%s1721_s5 + $0x10] sm:$0xff]  ;;  %vm1279_vm3 = vmmov 1  }
  0x71   :  { %s1439_s1 = sld [smem:[#allocation6 + $0x5]]  ;;  %s1441_s13 = sld [smem:[#allocation6 + $0x6]]  ;;  %v211_v9 = vld [vmem:[%s1721_s5 + $0x18] sm:$0x3f]  ;;  %v1471_v10 = vpack.c.bf16 %v291_v7, %v290_v5  ;;  %v292_v11 = vld [vmem:[%s1722_s6 + $0x10] sm:$0xff]  ;;  %vm1488_vm4 = vmpackc.low %vm216_vm1, %vm1279_vm3  ;;  %vm115_vm5 = vcmask 401408  }
  0x72   :  { %s1443_s23 = sld [smem:[#allocation6 + $0x7]]  ;;  %s1445_s24 = sld [smem:[#allocation7]]  ;;  %v293_v12 = vld [vmem:[%s1722_s6 + $0x18] sm:$0xff]  ;;  %1056 = vmatpush3.bf16.msra.mxu0 %v1055_v6  ;;  %v1058_v14 = vpack.c.bf16 %v211_v9, %v210_v8  ;;  %v294_v21 = vld [vmem:[%s1722_s6 + $0x20] sm:$0xff]  ;;  %v295_v24 = vld [vmem:[%s1722_s6 + $0x28] sm:$0xff]  ;;  %vm212_vm6 = vcmask 244736  }
  0x73   :  { %s1447_s3 = sld [smem:[#allocation7 + $0x1]]  ;;  %s1449_s2 = sld [smem:[#allocation7 + $0x2]]  ;;  %1063 = vmatpush3.bf16.msra.mxu1 %v1471_v10  ;;  %1057 = vmatprep.subr.bf16.mxu0 %v1276_v1  ;;  %v1492_v19 = vpack.c.bf16 %v293_v12, %v292_v11  ;;  %v1533_v29 = vpack.c.bf16 %v295_v24, %v294_v21  ;;  %v296_v31 = vld [vmem:[%s1722_s6 + $0x30] sm:$0x3]  ;;  %vm301_vm7 = vcmask 1041408   ;;  %v460_v42 = vld [vmem:[%s1724_s8] sm:$0xff] }
  0x74   :  { %s1460_s28 = sld [smem:[#allocation7 + $0x3]]  ;;  %s109_s30 = scalar_lea.vmem [#allocation10], %s1425_s21  ;;  %1064 = vmatprep.subr.bf16.mxu1 %v1276_v1  ;;  %v461_v45 = vld [vmem:[%s1724_s8 + $0x8] sm:$0xff]  ;;  %vm297_vm8 = vcmask 408576   ;;  %v462_v48 = vld [vmem:[%s1724_s8 + $0x10] sm:$0xff]  ;;  %v463_v49 = vld [vmem:[%s1724_s8 + $0x18] sm:$0xff] }
  0x75   :  { %v110_v13 = vld [vmem:[%s109_s30] sm:$0x1]  ;;  %s123_s7 = scalar_lea.vmem [#allocation10], %s1429_s22  ;;  %s135_s5 = scalar_lea.vmem [#allocation10], %s1431_s11  ;;  %v1634_v47 = vpack.c.bf16 %v461_v45, %v460_v42  ;;  %v1083_v51 = vpack.c.bf16 %v463_v49, %v462_v48  ;;  %v465_v54 = vld [vmem:[%s1724_s8 + $0x28] sm:$0xff]  ;;  %vm486_vm9 = vcmask 1043456  }
  0x76   :  { %112 = vst.msk [vmem:[#allocation2] sm:$0x1] %vm111_vm2, %v110_v13  ;;  %v124_v15 = vld [vmem:[%s123_s7] sm:$0x1]  ;;  %s147_s15 = scalar_lea.vmem [#allocation10], %s1435_s20  ;;  %s159_s21 = scalar_lea.vmem [#allocation10], %s1437_s0  ;;  %1060 = vmatpush3.bf16.msk.msra.mxu0 %vm1488_vm4, %v1058_v14  ;;  %vm1660_vm10 = vmpackc.low %vm486_vm9, %vm1279_vm3 }
  0x77   :  { %v136_v16 = vld [vmem:[%s135_s5] sm:$0x1]  ;;  %125 = vst.msk [vmem:[#allocation2 + $0x1] sm:$0x1] %vm111_vm2, %v124_v15  ;;  %s171_s20 = scalar_lea.vmem [#allocation10], %s1439_s1  ;;  %s183_s16 = scalar_lea.vmem [#allocation10], %s1441_s13  ;;  %1066 = vmatpush3.bf16.msra.mxu1 %v1492_v19  ;;  %1070 = vmatprep.subr.bf16.mxu0 %v1276_v1 }
  0x78   :  { %v148_v17 = vld [vmem:[%s147_s15] sm:$0x1]  ;;  %137 = vst.msk [vmem:[#allocation2 + $0x2] sm:$0x1] %vm111_vm2, %v136_v16  ;;  %s113_s18 = scalar_lea.vmem %s1720_s4, %s1445_s24  ;;  %s195_s25 = scalar_lea.vmem [#allocation10], %s1443_s23  ;;  %1067 = vmatprep.subr.bf16.mxu1 %v1276_v1  ;;  %v466_v57 = vld [vmem:[%s1724_s8 + $0x30] sm:$0xff] }
  0x79   :  { %149 = vst.msk [vmem:[#allocation2 + $0x3] sm:$0x1] %vm111_vm2, %v148_v17  ;;  %v160_v20 = vld [vmem:[%s159_s21] sm:$0x1]  ;;  %s126_s13 = scalar_lea.vmem %s1720_s4, %s1447_s3  ;;  %s138_s30 = scalar_lea.vmem %s1720_s4, %s1449_s2  ;;  %v467_v58 = vld [vmem:[%s1724_s8 + $0x38] sm:$0xf] }
  0x7a   :  { %161 = vst.msk [vmem:[#allocation2 + $0x4] sm:$0x1] %vm111_vm2, %v160_v20  ;;  %v172_v22 = vld [vmem:[%s171_s20] sm:$0x1]  ;;  %s150_s7 = scalar_lea.vmem %s1720_s4, %s1460_s28  ;;  %s869_s5 = sld [smem:[#allocation7 + $0x4]]  ;;  %v1089_v59 = vpack.c.bf16 %v467_v58, %v466_v57  ;;  %v470_v61 = vld [vmem:[%s1726_s10 + $0x8] sm:$0xff] }
  0x7b   :  { %v184_v23 = vld [vmem:[%s183_s16] sm:$0x1]  ;;  %173 = vst.msk [vmem:[#allocation2 + $0x5] sm:$0x1] %vm111_vm2, %v172_v22  ;;  %s872_s3 = sld [smem:[#allocation7 + $0x5]]  ;;  %s875_s2 = sld [smem:[#allocation7 + $0x6]]  ;;  %1069 = vmatpush3.bf16.msra.mxu1 %v1533_v29 }
  0x7c   :  { %185 = vst.msk [vmem:[#allocation2 + $0x6] sm:$0x1] %vm111_vm2, %v184_v23  ;;  %v196_v25 = vld [vmem:[%s195_s25] sm:$0x1]  ;;  %s1539_s15 = sld [smem:[#allocation7 + $0x7]]  ;;  %s1541_s28 = sld [smem:[#allocation8]]  ;;  %972 = vmatprep.subr.mxu1 %v1278_v2 }
  0x7d   :  { %v114_v26 = vld [vmem:[%s113_s18] sm:$0x1]  ;;  %197 = vst.msk [vmem:[#allocation2 + $0x7] sm:$0x1] %vm111_vm2, %v196_v25  ;;  %s1543_s21 = sld [smem:[#allocation8 + $0x1]]  ;;  %s1545_s22 = sld [smem:[#allocation8 + $0x2]] }
  0x7e   :  { %116 = vst.msk [vmem:[#allocation3] sm:$0x1] %vm115_vm5, %v114_v26  ;;  %v127_v27 = vld [vmem:[%s126_s13] sm:$0x1]  ;;  %s1547_s11 = sld [smem:[#allocation8 + $0x3]]  ;;  %s1549_s20 = sld [smem:[#allocation8 + $0x4]] }
  0x7f   :  { %v139_v28 = vld [vmem:[%s138_s30] sm:$0x1]  ;;  %128 = vst.msk [vmem:[#allocation3 + $0x1] sm:$0x1] %vm115_vm5, %v127_v27  ;;  %s1552_s16 = sld [smem:[#allocation8 + $0x5]]  ;;  %s1554_s17 = sld [smem:[#allocation8 + $0x6]]  ;;  %973 = vmatpush3.msk.msra.mxu1 %vm301_vm7, %v296_v31 }
  0x80   :  { %140 = vst.msk [vmem:[#allocation3 + $0x2] sm:$0x1] %vm115_vm5, %v139_v28  ;;  %v151_v30 = vld [vmem:[%s150_s7] sm:$0x1]  ;;  %s162_s25 = scalar_lea.vmem %s1720_s4, %s869_s5  ;;  %s1563_s1 = sld [smem:[#allocation8 + $0x7]]  ;;  %1079 = vmatprep.subr.bf16.mxu1 %v1276_v1  ;;  %vm482_vm11 = vcmask 490496  }
  0x81   :  { %152 = vst.msk [vmem:[#allocation3 + $0x3] sm:$0x1] %vm115_vm5, %v151_v30  ;;  %v163_v33 = vld [vmem:[%s162_s25] sm:$0x1]  ;;  %s174_s27 = scalar_lea.vmem %s1720_s4, %s872_s3  ;;  %s186_s23 = scalar_lea.vmem %s1720_s4, %s875_s2  ;;  %v884_v3 = vld [vmem:[#allocation12] ss:$0 sm:$0xff] }
  0x82   :  { %164 = vst.msk [vmem:[#allocation3 + $0x4] sm:$0x1] %vm115_vm5, %v163_v33  ;;  %v175_v34 = vld [vmem:[%s174_s27] sm:$0x1]  ;;  %s198_s7 = scalar_lea.vmem %s1720_s4, %s1539_s15  ;;  %s117_s0 = scalar_lea.vmem %s1720_s4, %s1541_s28  ;;  %v471_v13 = vld [vmem:[%s1726_s10 + $0x10] sm:$0xff]  ;;  %vm651_vm12 = vcmask 80896  }
  0x83   :  { %v187_v35 = vld [vmem:[%s186_s23] sm:$0x1]  ;;  %176 = vst.msk [vmem:[#allocation3 + $0x5] sm:$0x1] %vm115_vm5, %v175_v34  ;;  %s129_s15 = scalar_lea.vmem %s1720_s4, %s1543_s21  ;;  %s141_s28 = scalar_lea.vmem %s1720_s4, %s1545_s22  ;;  %v472_v14 = vld [vmem:[%s1726_s10 + $0x18] sm:$0x3f] }
  0x84   :  { %v204_v32 = vld [vmem:[#allocation2] sm:$0xff]  ;;  %188 = vst.msk [vmem:[#allocation3 + $0x6] sm:$0x1] %vm115_vm5, %v187_v35  ;;  %s153_s21 = scalar_lea.vmem %s1720_s4, %s1547_s11  ;;  %s165_s22 = scalar_lea.vmem %s1720_s4, %s1549_s20  ;;  %v1096_v15 = vpack.c.bf16 %v472_v14, %v471_v13  ;;  %v887_v16 = vld [vmem:[#allocation14] ss:$0 sm:$0xff] }
  0x85   :  { %958 = vmatmul.mubr.msk.f32.vlgmr.msra.gmra.mrb[0].mxu0 %vm212_vm6, %v204_v32  ;;  %v199_v36 = vld [vmem:[%s198_s7] sm:$0x1]  ;;  %s177_s23 = scalar_lea.vmem %s1720_s4, %s1552_s16  ;;  %s189_s7 = scalar_lea.vmem %s1720_s4, %s1554_s17  ;;  %v890_v22 = vld [vmem:[#allocation15] ss:$0 sm:$0xff]  ;;  %v1280_v32 = vmov 0  }
  0x86   :  { %1072 = vmatpush3.bf16.msra.mxu0 %v1471_v10  ;;  %v118_v37 = vld [vmem:[%s117_s0] sm:$0x1]  ;;  %200 = vst.msk [vmem:[#allocation3 + $0x7] sm:$0x1] %vm115_vm5, %v199_v36  ;;  %991 = vmatprep.mubr.msk.f32.mxu0 %vm1277_vm0, %v1278_v2  ;;  %s201_s16 = scalar_lea.vmem %s1720_s4, %s1563_s1  ;;  %v894_v33 = vld [vmem:[#allocation9] ss:$0 sm:$0xff] }
  0x87   :  { %1073 = vmatprep.subr.bf16.mxu0 %v1276_v1  ;;  %119 = vst.msk [vmem:[#allocation4] sm:$0x1] %vm115_vm5, %v118_v37  ;;  %v130_v38 = vld [vmem:[%s129_s15] sm:$0x1]  ;;  %1133 = vset.pattern.permute.xlu1 %v1280_v32 }
  0x88   :  { %v142_v39 = vld [vmem:[%s141_s28] sm:$0x1]  ;;  %131 = vst.msk [vmem:[#allocation4 + $0x1] sm:$0x1] %vm115_vm5, %v130_v38  ;;  %1134 = vset.pattern.permute.xlu0 %v1280_v32 }
  0x89   :  { %143 = vst.msk [vmem:[#allocation4 + $0x2] sm:$0x1] %vm115_vm5, %v142_v39  ;;  %v154_v40 = vld [vmem:[%s153_s21] sm:$0x1] }
  0x8a   :  { %v166_v41 = vld [vmem:[%s165_s22] sm:$0x1]  ;;  %155 = vst.msk [vmem:[#allocation4 + $0x3] sm:$0x1] %vm115_vm5, %v154_v40  ;;  %1075 = vmatpush3.bf16.msra.mxu0 %v1492_v19 }
  0x8b   :  { %167 = vst.msk [vmem:[#allocation4 + $0x4] sm:$0x1] %vm115_vm5, %v166_v41  ;;  %v178_v43 = vld [vmem:[%s177_s23] sm:$0x1]  ;;  %1076 = vmatprep.subr.bf16.mxu0 %v1276_v1 }
  0x8c   :  { %v190_v44 = vld [vmem:[%s189_s7] sm:$0x1]  ;;  %179 = vst.msk [vmem:[#allocation4 + $0x5] sm:$0x1] %vm115_vm5, %v178_v43 }
  0x8d   :  { %191 = vst.msk [vmem:[#allocation4 + $0x6] sm:$0x1] %vm115_vm5, %v190_v44  ;;  %v202_v46 = vld [vmem:[%s201_s16] sm:$0x1]  ;;  %v205_v50 = vld [vmem:[#allocation3] sm:$0xff] }
  0x8e   :  { %203 = vst.msk [vmem:[#allocation4 + $0x7] sm:$0x1] %vm115_vm5, %v202_v46  ;;  %1078 = vmatpush3.bf16.msra.mxu0 %v1533_v29  ;;  %975 = vmatmul.mubr.msk.f32.vlgmr.msra.gmra.mrb[0].mxu1 %vm297_vm8, %v205_v50  ;;  %v464_v53 = vld [vmem:[%s1724_s8 + $0x20] sm:$0xff] }
  0x8f   :  { %989 = vmatprep.subr.mxu0 %v1278_v2  ;;  %1081 = vmatpush3.bf16.msra.mxu1 %v1634_v47  ;;  %v1086_v55 = vpack.c.bf16 %v465_v54, %v464_v53  ;;  %v469_v60 = vld [vmem:[%s1726_s10] sm:$0xff] }
  0x90   :  { %1010 = vmatprep.mubr.msk.f32.mxu1 %vm1277_vm0, %v1278_v2  ;;  %1082 = vmatprep.subr.bf16.mxu1 %v1276_v1  ;;  %v1093_v62 = vpack.c.bf16 %v470_v61, %v469_v60 }
  0x92   :  { %990 = vmatpush3.msk.msra.mxu0 %vm301_vm7, %v296_v31 }
  0x93   :  { %1092 = vmatprep.subr.bf16.mxu0 %v1276_v1  ;;  %1084 = vmatpush3.bf16.msra.mxu1 %v1083_v51 }
  0x94   :  { %1085 = vmatprep.subr.bf16.mxu1 %v1276_v1 }
  0x95   :  { %v206_v52 = vld [vmem:[#allocation4] sm:$0xff] }
  0x96   :  { %992 = vmatmul.mubr.msk.f32.vlgmr.msra.gmra.mrb[2].mxu0 %vm297_vm8, %v206_v52 }
  0x97   :  { %1021 = vmatprep.mubr.msk.f32.mxu0 %vm1277_vm0, %v1278_v2  ;;  %1087 = vmatpush3.bf16.msra.mxu1 %v1086_v55 }
  0x98   :  { %1088 = vmatprep.subr.bf16.mxu1 %v1276_v1  ;;  %1094 = vmatpush3.bf16.msra.mxu0 %v1093_v62 }
  0x99   :  { %1095 = vmatprep.subr.bf16.mxu0 %v1276_v1 }
  0x9b   :  { %1091 = vmatpush3.bf16.msk.msra.mxu1 %vm1660_vm10, %v1089_v59 }
  0x9c   :  { %1112 = vmatprep.subr.bf16.mxu1 %v1276_v1  ;;  %1098 = vmatpush3.bf16.msk.msra.mxu0 %vm1488_vm4, %v1096_v15 }
  0x9d   :  { %1099 = vmatprep.subr.bf16.mxu0 %v1276_v1 }
 0x158   :  { %v286_v63 = vpop.f32.mrb[0].mxu0 }
 0x159   :  { %v959_v0 = vpop.f32.mrb[1].mxu0 }
 0x161   :  { %v371_v4 = vpop.f32.mrb[0].mxu1 }
 0x162   :  { %v375_v5 = vadd.f32 %v371_v4, %v286_v63  ;;  %v976_v6 = vpop.f32.mrb[1].mxu1 }
 0x164   :  { %v382_v7 = vadd.f32 %v884_v3, %v375_v5 }
 0x166   :  { %v383_v9 = vmax.f32 %v382_v7, 0.0 }
 0x168   :  { %1011 = vmatmul.mubr.msk.f32.vlgmr.msra.gmra.mrb[2].mxu1 %vm482_vm11, %v383_v9 }
 0x169   :  { %v453_v8 = vpop.f32.mrb[2].mxu0  ;;  %1114 = vmatpush3.bf16.msra.mxu1 %v1093_v62  ;;  %1051 = vmatprep.mubr.msk.f32.mxu1 %vm1277_vm0, %v1278_v2 }
 0x16a   :  { %v457_v10 = vadd.f32 %v453_v8, %v286_v63  ;;  %v993_v11 = vpop.f32.mrb[3].mxu0  ;;  %1115 = vmatprep.subr.bf16.mxu1 %v1276_v1 }
 0x16c   :  { %v458_v12 = vadd.f32 %v884_v3, %v457_v10 }
 0x16d   :  { %1118 = vmatpush3.bf16.msk.msra.mxu1 %vm1488_vm4, %v1096_v15 }
 0x16e   :  { %v459_v18 = vmax.f32 %v458_v12, 0.0 }
 0x23b   :  { %v556_v17 = vpop.f32.mrb[2].mxu1 }
 0x23c   :  { %v557_v19 = vadd.f32 %v887_v16, %v556_v17  ;;  %v1012_v20 = vpop.f32.mrb[3].mxu1 }
 0x23e   :  { %v560_v21 = vmax.f32 %v557_v19, 0.0 }
 0x240   :  { %1022 = vmatmul.mubr.msk.f32.vlgmr.msra.gmra.mrb[4].mxu0 %vm212_vm6, %v560_v21 }
 0x241   :  { %1101 = vmatpush3.bf16.msra.mxu0 %v1634_v47  ;;  %1040 = vmatprep.mubr.msk.f32.mxu0 %vm1277_vm0, %v1278_v2  ;;  %v893_v2 = vld [vmem:[%s1728_s12] ss:$0 sm:$0xff] }
 0x242   :  { %1102 = vmatprep.subr.bf16.mxu0 %v1276_v1 }
 0x245   :  { %1104 = vmatpush3.bf16.msra.mxu0 %v1083_v51 }
 0x246   :  { %1105 = vmatprep.subr.bf16.mxu0 %v1276_v1 }
 0x249   :  { %1107 = vmatpush3.bf16.msra.mxu0 %v1086_v55 }
 0x24a   :  { %1108 = vmatprep.subr.bf16.mxu0 %v1276_v1 }
 0x24d   :  { %1111 = vmatpush3.bf16.msk.msra.mxu0 %vm1660_vm10, %v1089_v59 }
 0x250   :  { %1041 = vmatmul.mubr.msk.f32.vlgmr.msra.gmra.mrb[6].mxu0 %vm482_vm11, %v459_v18 }
 0x313   :  { %v639_v23 = vpop.f32.mrb[4].mxu0 }
 0x314   :  { %v640_v24 = vadd.f32 %v890_v22, %v639_v23  ;;  %v1023_v25 = vpop.f32.mrb[5].mxu0 }
 0x316   :  { %v643_v26 = vmax.f32 %v640_v24, 0.0 }
 0x318   :  { %v650_v27 = vmul.f32 %v893_v2, %v643_v26 }
 0x31a   :  { %v652_v28 = vsel %vm651_vm12, %v650_v27, 0.0 }
 0x31b   :  { %653 = vadd.xlane.f32.xlu0 %v652_v28 }
 0x323   :  { %v737_v1 = vpop.f32.mrb[6].mxu0 }
 0x324   :  { %v738_v29 = vadd.f32 %v887_v16, %v737_v1  ;;  %v1042_v30 = vpop.f32.mrb[7].mxu0 }
 0x326   :  { %v741_v31 = vmax.f32 %v738_v29, 0.0 }
 0x328   :  { %1052 = vmatmul.mubr.msk.f32.vlgmr.msra.gmra.mrb[4].mxu1 %vm212_vm6, %v741_v31 }
 0x3a8   :  { %v654_v34 = vpop.xlane.xlu0 %653 }
 0x3a9   :  { %v661_v35 = vadd.f32 %v894_v33, %v654_v34 }
 0x3ab   :  { %664 = vperm.xlu1 %1133, %v661_v35  }
 0x3fb   :  { %v811_v36 = vpop.f32.mrb[4].mxu1 }
 0x3fc   :  { %v812_v37 = vadd.f32 %v890_v22, %v811_v36  ;;  %v1053_v38 = vpop.f32.mrb[5].mxu1 }
 0x3fe   :  { %v815_v39 = vmax.f32 %v812_v37, 0.0 }
 0x400   :  { %v816_v40 = vmul.f32 %v893_v2, %v815_v39 }
 0x402   :  { %v817_v41 = vsel %vm651_vm12, %v816_v40, 0.0 }
 0x403   :  { %818 = vadd.xlane.f32.xlu0 %v817_v41 }
 0x42a   :  { %v665_v42 = vpop.permute.xlu1 %664 }
 0x42b   :  { %667 = vst [vmem:[%s1729_s14] sm:$0xff] %v665_v42 }
 0x490   :  { %v819_v43 = vpop.xlane.xlu0 %818 }
 0x491   :  { %v820_v44 = vadd.f32 %v894_v33, %v819_v43 }
 0x493   :  { %823 = vperm.xlu1 %1133, %v820_v44  }
 0x512   :  { %v824_v45 = vpop.permute.xlu1 %823 }
 0x513   :  { %899 = vst [vmem:[%s1729_s14 + $0x8] sm:$0xff] %v824_v45 }
 0x514   :  { %832 = vsyncpa [#allocation11], 1 }
 0x515   :  { %833 = vsyncpa [#allocation13], 1 }
 0x516   :  { %834 = vsyncpa [#allocation16], 1 }

</bundles_post_ra>
